<compile_context>
chip_gen: v5e
topology: v5e:2x2
jax: 0.10.0
libtpu: 0.0.40
codegen_flags: <defaults>
</compile_context>

<pallas_src>
import jax
import jax.numpy as jnp
from jax.experimental import pallas as pl
from jax.experimental.pallas import tpu as pltpu

HEAD_LANES = 128  # lane-dense fused head output width


# ----------------------------- Pallas kernel --------------------------------
def lstm_mlp_kernel(x_ref,          # [T*Bp, D]   time-major flattened LSTM input
                    wih_ref,        # [D, 4H]     LSTM input weights (transposed, i|f|g|o)
                    whh_ref,        # [H, 4H]     LSTM hidden weights (transposed)
                    b_ref,          # [1, 4H]     bias_ih + bias_hh
                    wm_ref,         # [H, M]      mlp weight (transposed)
                    bm_ref,         # [1, M]
                    whead_ref,      # [M, 128]    fused [event | time] head weight, lane-padded
                    bhead_ref,      # [1, 128]    fused head bias, lane-padded
                    out_ref):       # [Bp, 128]   fused head output (event | time | zero pad)
    Bp = out_ref.shape[0]
    T = x_ref.shape[0] // Bp
    H = whh_ref.shape[0]

    # Hoisted input projection: one well-shaped matmul outside the serial chain.
    gates_x = (jnp.dot(x_ref[...], wih_ref[...],
                       preferred_element_type=jnp.float32)
               + b_ref[...])                                   # [T*Bp, 4H]

    whh = whh_ref[...]
    h = jnp.zeros((Bp, H), jnp.float32)
    c = jnp.zeros((Bp, H), jnp.float32)

    # Fully unrolled recurrence (T is small and static).
    for t in range(T):
        g_x = gates_x[t * Bp:(t + 1) * Bp, :]                  # static, sublane-aligned slice
        gates = g_x + jnp.dot(h, whh, preferred_element_type=jnp.float32)  # [Bp, 4H]
        # One sigmoid + one tanh over the full 128-lane vreg, then slice.
        sig_all = jax.nn.sigmoid(gates)
        tanh_all = jnp.tanh(gates)
        i_g = sig_all[:, 0 * H:1 * H]
        f_g = sig_all[:, 1 * H:2 * H]
        g_g = tanh_all[:, 2 * H:3 * H]
        o_g = sig_all[:, 3 * H:4 * H]
        c = f_g * c + i_g * g_g
        h = o_g * jnp.tanh(c)

    # mlp_output = tanh(mlp(h_last))   (dropout is identity in eval)
    mlp = jnp.tanh(jnp.dot(h, wm_ref[...],
                           preferred_element_type=jnp.float32) + bm_ref[...])

    # Fused event/time heads -> single lane-dense store.
    out_ref[...] = (jnp.dot(mlp, whead_ref[...],
                            preferred_element_type=jnp.float32) + bhead_ref[...])


# ------------------------------- wrapper -------------------------------------
def net_forward(input_time, event_input, gcn_out, params):
    """Replicates Net.forward (eval mode). Gather/concat/pad glue stays in
    plain JAX; the LSTM recurrence and all dense layers run inside the Pallas
    kernel."""
    B, T = input_time.shape

    # embed(one_hot(event)) == embed.weight[0, event] + embed.bias
    event_embedding = params["embed_w"][0][event_input] + params["embed_b"][0]  # [B, T]

    # torch.index_select(gcn_out, 0, event_input.reshape(-1)).reshape(B, T, -1)
    gathered = gcn_out[event_input.reshape(-1)].reshape(B, T, -1)               # [B, T, C]

    lstm_input = jnp.concatenate(
        [gathered, input_time[..., None], event_embedding[..., None]], axis=-1
    ).astype(jnp.float32)                                                       # [B, T, D]

    # Pad batch to the sublane width and flatten time-major: row = t*Bp + b.
    Bp = ((B + 7) // 8) * 8
    x_tm = jnp.transpose(lstm_input, (1, 0, 2))                                 # [T, B, D]
    x_tm = jnp.pad(x_tm, ((0, 0), (0, Bp - B), (0, 0)))                         # [T, Bp, D]
    x_flat = x_tm.reshape(T * Bp, -1)                                           # [T*Bp, D]

    C = params["we_t"].shape[1]

    # Fuse the two output heads into one lane-padded weight/bias.
    w_head = jnp.concatenate([params["we_t"], params["wtl_t"]], axis=1)         # [M, C+1]
    b_head = jnp.concatenate([params["be"], params["btl"]], axis=1)             # [1, C+1]
    pad = HEAD_LANES - w_head.shape[1]
    w_head = jnp.pad(w_head, ((0, 0), (0, pad)))                                # [M, 128]
    b_head = jnp.pad(b_head, ((0, 0), (0, pad)))                                # [1, 128]

    vmem = pl.BlockSpec(memory_space=pltpu.MemorySpace.VMEM)
    fused_out = pl.pallas_call(
        lstm_mlp_kernel,
        out_shape=jax.ShapeDtypeStruct((Bp, HEAD_LANES), jnp.float32),
        in_specs=[vmem] * 8,
        out_specs=vmem,
    )(
        x_flat,
        params["wih_t"], params["whh_t"], params["b_lstm"],
        params["wm_t"], params["bm"],
        w_head, b_head,
    )

    event_out = fused_out[:B, :C]
    time_out = fused_out[:B, C:C + 1]
    return event_out, time_out


# --------------------------- pure-JAX reference -------------------------------
def net_forward_ref(input_time, event_input, gcn_out, params):
    B, T = input_time.shape
    emb = params["embed_w"][0][event_input] + params["embed_b"][0]
    gathered = gcn_out[event_input.reshape(-1)].reshape(B, T, -1)
    x = jnp.concatenate([gathered, input_time[..., None], emb[..., None]], axis=-1)
    H = params["whh_t"].shape[0]
    h = jnp.zeros((B, H), jnp.float32)
    c = jnp.zeros((B, H), jnp.float32)
    for t in range(T):
        gates = x[:, t, :] @ params["wih_t"] + h @ params["whh_t"] + params["b_lstm"]
        i_g = jax.nn.sigmoid(gates[:, 0 * H:1 * H])
        f_g = jax.nn.sigmoid(gates[:, 1 * H:2 * H])
        g_g = jnp.tanh(gates[:, 2 * H:3 * H])
        o_g = jax.nn.sigmoid(gates[:, 3 * H:4 * H])
        c = f_g * c + i_g * g_g
        h = o_g * jnp.tanh(c)
    mlp = jnp.tanh(h @ params["wm_t"] + params["bm"])
    return mlp @ params["we_t"] + params["be"], mlp @ params["wtl_t"] + params["btl"]


# --------------------------------- main ---------------------------------------
if __name__ == "__main__":
    # config: event_class=4, hid_dim=32, mlp_dim=16; batch=2, seq=8
    C_CLASS, HID, MLP = 4, 32, 16
    B, T = 2, 8
    D_IN = C_CLASS + 2  # gcn feature (=event_class) + time + event_embedding

    key = jax.random.PRNGKey(0)
    ks = jax.random.split(key, 16)

    params = {
        "embed_w": 0.1 * jax.random.normal(ks[0], (1, C_CLASS), jnp.float32),
        "embed_b": 0.1 * jax.random.normal(ks[1], (1,), jnp.float32),
        # LSTM params, PyTorch layout transposed to [in, 4H] / [H, 4H]
        "wih_t": 0.1 * jax.random.normal(ks[2], (D_IN, 4 * HID), jnp.float32),
        "whh_t": 0.1 * jax.random.normal(ks[3], (HID, 4 * HID), jnp.float32),
        "b_lstm": 0.1 * jax.random.normal(ks[4], (1, 4 * HID), jnp.float32),
        # mlp + heads (transposed to [in, out])
        "wm_t": 0.1 * jax.random.normal(ks[5], (HID, MLP), jnp.float32),
        "bm": 0.1 * jax.random.normal(ks[6], (1, MLP), jnp.float32),
        "we_t": 0.1 * jax.random.normal(ks[7], (MLP, C_CLASS), jnp.float32),
        "be": 0.1 * jax.random.normal(ks[8], (1, C_CLASS), jnp.float32),
        "wtl_t": 0.1 * jax.random.normal(ks[9], (MLP, 1), jnp.float32),
        "btl": 0.1 * jax.random.normal(ks[10], (1, 1), jnp.float32),
    }

    input_time = jax.random.uniform(ks[11], (B, T), jnp.float32)
    event_input = jax.random.randint(ks[12], (B, T), 0, C_CLASS)
    gcn_out = 0.1 * jax.random.normal(ks[13], (C_CLASS, C_CLASS), jnp.float32)

    # TODO(synk): dropout layers are eval-mode identity; training-mode dropout not implemented.
    event_out, time_out = jax.jit(net_forward)(input_time, event_input, gcn_out, params)
    jax.block_until_ready((event_out, time_out))

    ev_ref, tm_ref = net_forward_ref(input_time, event_input, gcn_out, params)
    assert event_out.shape == (B, C_CLASS) and time_out.shape == (B, 1)
    assert jnp.allclose(event_out, ev_ref, atol=2e-3, rtol=2e-3)
    assert jnp.allclose(time_out, tm_ref, atol=2e-3, rtol=2e-3)

    print("KERNEL_OK")
</pallas_src>

<mosaic_0001>
module attributes {stable_mosaic.version = 11 : i64} {
  func.func @lstm_mlp_kernel(%arg0: memref<64x6xf32, #tpu.memory_space<vmem>>, %arg1: memref<6x128xf32, #tpu.memory_space<vmem>>, %arg2: memref<32x128xf32, #tpu.memory_space<vmem>>, %arg3: memref<1x128xf32, #tpu.memory_space<vmem>>, %arg4: memref<32x16xf32, #tpu.memory_space<vmem>>, %arg5: memref<1x16xf32, #tpu.memory_space<vmem>>, %arg6: memref<16x128xf32, #tpu.memory_space<vmem>>, %arg7: memref<1x128xf32, #tpu.memory_space<vmem>>, %arg8: memref<8x128xf32, #tpu.memory_space<vmem>>) attributes {dimension_semantics = [], scalar_prefetch = 0 : i64, scratch_operands = 0 : i64, tpu.core_type = #tpu.core_type<tc>} {
    %c0 = arith.constant 0 : index
    %c0_0 = arith.constant 0 : index
    %0 = vector.load %arg0[%c0, %c0_0] : memref<64x6xf32, #tpu.memory_space<vmem>>, vector<64x6xf32>
    %c0_1 = arith.constant 0 : index
    %c0_2 = arith.constant 0 : index
    %1 = vector.load %arg1[%c0_1, %c0_2] : memref<6x128xf32, #tpu.memory_space<vmem>>, vector<6x128xf32>
    %cst = arith.constant dense<0.000000e+00> : vector<64x128xf32>
    %2 = tpu.matmul %0, %1, %cst {dimension_numbers = #tpu.dot_dimension_numbers<[1], [0], [0], [1], [0, 0, 1, 1], [], []>} : vector<64x6xf32>, vector<6x128xf32>, vector<64x128xf32> -> vector<64x128xf32>
    %c0_3 = arith.constant 0 : index
    %c0_4 = arith.constant 0 : index
    %3 = vector.load %arg3[%c0_3, %c0_4] : memref<1x128xf32, #tpu.memory_space<vmem>>, vector<1x128xf32>
    %4 = vector.broadcast %3 : vector<1x128xf32> to vector<64x128xf32>
    %5 = arith.addf %2, %4 : vector<64x128xf32>
    %c0_5 = arith.constant 0 : index
    %c0_6 = arith.constant 0 : index
    %6 = vector.load %arg2[%c0_5, %c0_6] : memref<32x128xf32, #tpu.memory_space<vmem>>, vector<32x128xf32>
    %cst_7 = arith.constant 0.000000e+00 : f32
    %7 = vector.broadcast %cst_7 : f32 to vector<8x32xf32>
    %cst_8 = arith.constant 0.000000e+00 : f32
    %8 = vector.broadcast %cst_8 : f32 to vector<8x32xf32>
    %9 = vector.extract_strided_slice %5 {offsets = [0, 0], sizes = [8, 128], strides = [1, 1]} : vector<64x128xf32> to vector<8x128xf32>
    %cst_9 = arith.constant dense<0.000000e+00> : vector<8x128xf32>
    %10 = tpu.matmul %7, %6, %cst_9 {dimension_numbers = #tpu.dot_dimension_numbers<[1], [0], [0], [1], [0, 0, 1, 1], [], []>} : vector<8x32xf32>, vector<32x128xf32>, vector<8x128xf32> -> vector<8x128xf32>
    %11 = arith.addf %9, %10 : vector<8x128xf32>
    %12 = arith.negf %11 : vector<8x128xf32>
    %13 = math.exp %12 : vector<8x128xf32>
    %cst_10 = arith.constant 1.000000e+00 : f32
    %14 = vector.broadcast %cst_10 : f32 to vector<8x128xf32>
    %15 = arith.addf %14, %13 : vector<8x128xf32>
    %16 = arith.divf %14, %15 : vector<8x128xf32>
    %17 = math.tanh %11 : vector<8x128xf32>
    %18 = vector.extract_strided_slice %16 {offsets = [0, 0], sizes = [8, 32], strides = [1, 1]} : vector<8x128xf32> to vector<8x32xf32>
    %19 = vector.extract_strided_slice %16 {offsets = [0, 32], sizes = [8, 32], strides = [1, 1]} : vector<8x128xf32> to vector<8x32xf32>
    %20 = vector.extract_strided_slice %17 {offsets = [0, 64], sizes = [8, 32], strides = [1, 1]} : vector<8x128xf32> to vector<8x32xf32>
    %21 = vector.extract_strided_slice %16 {offsets = [0, 96], sizes = [8, 32], strides = [1, 1]} : vector<8x128xf32> to vector<8x32xf32>
    %22 = arith.mulf %19, %8 : vector<8x32xf32>
    %23 = arith.mulf %18, %20 : vector<8x32xf32>
    %24 = arith.addf %22, %23 : vector<8x32xf32>
    %25 = math.tanh %24 : vector<8x32xf32>
    %26 = arith.mulf %21, %25 : vector<8x32xf32>
    %27 = vector.extract_strided_slice %5 {offsets = [8, 0], sizes = [8, 128], strides = [1, 1]} : vector<64x128xf32> to vector<8x128xf32>
    %cst_11 = arith.constant dense<0.000000e+00> : vector<8x128xf32>
    %28 = tpu.matmul %26, %6, %cst_11 {dimension_numbers = #tpu.dot_dimension_numbers<[1], [0], [0], [1], [0, 0, 1, 1], [], []>} : vector<8x32xf32>, vector<32x128xf32>, vector<8x128xf32> -> vector<8x128xf32>
    %29 = arith.addf %27, %28 : vector<8x128xf32>
    %30 = arith.negf %29 : vector<8x128xf32>
    %31 = math.exp %30 : vector<8x128xf32>
    %cst_12 = arith.constant 1.000000e+00 : f32
    %32 = vector.broadcast %cst_12 : f32 to vector<8x128xf32>
    %33 = arith.addf %32, %31 : vector<8x128xf32>
    %34 = arith.divf %32, %33 : vector<8x128xf32>
    %35 = math.tanh %29 : vector<8x128xf32>
    %36 = vector.extract_strided_slice %34 {offsets = [0, 0], sizes = [8, 32], strides = [1, 1]} : vector<8x128xf32> to vector<8x32xf32>
    %37 = vector.extract_strided_slice %34 {offsets = [0, 32], sizes = [8, 32], strides = [1, 1]} : vector<8x128xf32> to vector<8x32xf32>
    %38 = vector.extract_strided_slice %35 {offsets = [0, 64], sizes = [8, 32], strides = [1, 1]} : vector<8x128xf32> to vector<8x32xf32>
    %39 = vector.extract_strided_slice %34 {offsets = [0, 96], sizes = [8, 32], strides = [1, 1]} : vector<8x128xf32> to vector<8x32xf32>
    %40 = arith.mulf %37, %24 : vector<8x32xf32>
    %41 = arith.mulf %36, %38 : vector<8x32xf32>
    %42 = arith.addf %40, %41 : vector<8x32xf32>
    %43 = math.tanh %42 : vector<8x32xf32>
    %44 = arith.mulf %39, %43 : vector<8x32xf32>
    %45 = vector.extract_strided_slice %5 {offsets = [16, 0], sizes = [8, 128], strides = [1, 1]} : vector<64x128xf32> to vector<8x128xf32>
    %cst_13 = arith.constant dense<0.000000e+00> : vector<8x128xf32>
    %46 = tpu.matmul %44, %6, %cst_13 {dimension_numbers = #tpu.dot_dimension_numbers<[1], [0], [0], [1], [0, 0, 1, 1], [], []>} : vector<8x32xf32>, vector<32x128xf32>, vector<8x128xf32> -> vector<8x128xf32>
    %47 = arith.addf %45, %46 : vector<8x128xf32>
    %48 = arith.negf %47 : vector<8x128xf32>
    %49 = math.exp %48 : vector<8x128xf32>
    %cst_14 = arith.constant 1.000000e+00 : f32
    %50 = vector.broadcast %cst_14 : f32 to vector<8x128xf32>
    %51 = arith.addf %50, %49 : vector<8x128xf32>
    %52 = arith.divf %50, %51 : vector<8x128xf32>
    %53 = math.tanh %47 : vector<8x128xf32>
    %54 = vector.extract_strided_slice %52 {offsets = [0, 0], sizes = [8, 32], strides = [1, 1]} : vector<8x128xf32> to vector<8x32xf32>
    %55 = vector.extract_strided_slice %52 {offsets = [0, 32], sizes = [8, 32], strides = [1, 1]} : vector<8x128xf32> to vector<8x32xf32>
    %56 = vector.extract_strided_slice %53 {offsets = [0, 64], sizes = [8, 32], strides = [1, 1]} : vector<8x128xf32> to vector<8x32xf32>
    %57 = vector.extract_strided_slice %52 {offsets = [0, 96], sizes = [8, 32], strides = [1, 1]} : vector<8x128xf32> to vector<8x32xf32>
    %58 = arith.mulf %55, %42 : vector<8x32xf32>
    %59 = arith.mulf %54, %56 : vector<8x32xf32>
    %60 = arith.addf %58, %59 : vector<8x32xf32>
    %61 = math.tanh %60 : vector<8x32xf32>
    %62 = arith.mulf %57, %61 : vector<8x32xf32>
    %63 = vector.extract_strided_slice %5 {offsets = [24, 0], sizes = [8, 128], strides = [1, 1]} : vector<64x128xf32> to vector<8x128xf32>
    %cst_15 = arith.constant dense<0.000000e+00> : vector<8x128xf32>
    %64 = tpu.matmul %62, %6, %cst_15 {dimension_numbers = #tpu.dot_dimension_numbers<[1], [0], [0], [1], [0, 0, 1, 1], [], []>} : vector<8x32xf32>, vector<32x128xf32>, vector<8x128xf32> -> vector<8x128xf32>
    %65 = arith.addf %63, %64 : vector<8x128xf32>
    %66 = arith.negf %65 : vector<8x128xf32>
    %67 = math.exp %66 : vector<8x128xf32>
    %cst_16 = arith.constant 1.000000e+00 : f32
    %68 = vector.broadcast %cst_16 : f32 to vector<8x128xf32>
    %69 = arith.addf %68, %67 : vector<8x128xf32>
    %70 = arith.divf %68, %69 : vector<8x128xf32>
    %71 = math.tanh %65 : vector<8x128xf32>
    %72 = vector.extract_strided_slice %70 {offsets = [0, 0], sizes = [8, 32], strides = [1, 1]} : vector<8x128xf32> to vector<8x32xf32>
    %73 = vector.extract_strided_slice %70 {offsets = [0, 32], sizes = [8, 32], strides = [1, 1]} : vector<8x128xf32> to vector<8x32xf32>
    %74 = vector.extract_strided_slice %71 {offsets = [0, 64], sizes = [8, 32], strides = [1, 1]} : vector<8x128xf32> to vector<8x32xf32>
    %75 = vector.extract_strided_slice %70 {offsets = [0, 96], sizes = [8, 32], strides = [1, 1]} : vector<8x128xf32> to vector<8x32xf32>
    %76 = arith.mulf %73, %60 : vector<8x32xf32>
    %77 = arith.mulf %72, %74 : vector<8x32xf32>
    %78 = arith.addf %76, %77 : vector<8x32xf32>
    %79 = math.tanh %78 : vector<8x32xf32>
    %80 = arith.mulf %75, %79 : vector<8x32xf32>
    %81 = vector.extract_strided_slice %5 {offsets = [32, 0], sizes = [8, 128], strides = [1, 1]} : vector<64x128xf32> to vector<8x128xf32>
    %cst_17 = arith.constant dense<0.000000e+00> : vector<8x128xf32>
    %82 = tpu.matmul %80, %6, %cst_17 {dimension_numbers = #tpu.dot_dimension_numbers<[1], [0], [0], [1], [0, 0, 1, 1], [], []>} : vector<8x32xf32>, vector<32x128xf32>, vector<8x128xf32> -> vector<8x128xf32>
    %83 = arith.addf %81, %82 : vector<8x128xf32>
    %84 = arith.negf %83 : vector<8x128xf32>
    %85 = math.exp %84 : vector<8x128xf32>
    %cst_18 = arith.constant 1.000000e+00 : f32
    %86 = vector.broadcast %cst_18 : f32 to vector<8x128xf32>
    %87 = arith.addf %86, %85 : vector<8x128xf32>
    %88 = arith.divf %86, %87 : vector<8x128xf32>
    %89 = math.tanh %83 : vector<8x128xf32>
    %90 = vector.extract_strided_slice %88 {offsets = [0, 0], sizes = [8, 32], strides = [1, 1]} : vector<8x128xf32> to vector<8x32xf32>
    %91 = vector.extract_strided_slice %88 {offsets = [0, 32], sizes = [8, 32], strides = [1, 1]} : vector<8x128xf32> to vector<8x32xf32>
    %92 = vector.extract_strided_slice %89 {offsets = [0, 64], sizes = [8, 32], strides = [1, 1]} : vector<8x128xf32> to vector<8x32xf32>
    %93 = vector.extract_strided_slice %88 {offsets = [0, 96], sizes = [8, 32], strides = [1, 1]} : vector<8x128xf32> to vector<8x32xf32>
    %94 = arith.mulf %91, %78 : vector<8x32xf32>
    %95 = arith.mulf %90, %92 : vector<8x32xf32>
    %96 = arith.addf %94, %95 : vector<8x32xf32>
    %97 = math.tanh %96 : vector<8x32xf32>
    %98 = arith.mulf %93, %97 : vector<8x32xf32>
    %99 = vector.extract_strided_slice %5 {offsets = [40, 0], sizes = [8, 128], strides = [1, 1]} : vector<64x128xf32> to vector<8x128xf32>
    %cst_19 = arith.constant dense<0.000000e+00> : vector<8x128xf32>
    %100 = tpu.matmul %98, %6, %cst_19 {dimension_numbers = #tpu.dot_dimension_numbers<[1], [0], [0], [1], [0, 0, 1, 1], [], []>} : vector<8x32xf32>, vector<32x128xf32>, vector<8x128xf32> -> vector<8x128xf32>
    %101 = arith.addf %99, %100 : vector<8x128xf32>
    %102 = arith.negf %101 : vector<8x128xf32>
    %103 = math.exp %102 : vector<8x128xf32>
    %cst_20 = arith.constant 1.000000e+00 : f32
    %104 = vector.broadcast %cst_20 : f32 to vector<8x128xf32>
    %105 = arith.addf %104, %103 : vector<8x128xf32>
    %106 = arith.divf %104, %105 : vector<8x128xf32>
    %107 = math.tanh %101 : vector<8x128xf32>
    %108 = vector.extract_strided_slice %106 {offsets = [0, 0], sizes = [8, 32], strides = [1, 1]} : vector<8x128xf32> to vector<8x32xf32>
    %109 = vector.extract_strided_slice %106 {offsets = [0, 32], sizes = [8, 32], strides = [1, 1]} : vector<8x128xf32> to vector<8x32xf32>
    %110 = vector.extract_strided_slice %107 {offsets = [0, 64], sizes = [8, 32], strides = [1, 1]} : vector<8x128xf32> to vector<8x32xf32>
    %111 = vector.extract_strided_slice %106 {offsets = [0, 96], sizes = [8, 32], strides = [1, 1]} : vector<8x128xf32> to vector<8x32xf32>
    %112 = arith.mulf %109, %96 : vector<8x32xf32>
    %113 = arith.mulf %108, %110 : vector<8x32xf32>
    %114 = arith.addf %112, %113 : vector<8x32xf32>
    %115 = math.tanh %114 : vector<8x32xf32>
    %116 = arith.mulf %111, %115 : vector<8x32xf32>
    %117 = vector.extract_strided_slice %5 {offsets = [48, 0], sizes = [8, 128], strides = [1, 1]} : vector<64x128xf32> to vector<8x128xf32>
    %cst_21 = arith.constant dense<0.000000e+00> : vector<8x128xf32>
    %118 = tpu.matmul %116, %6, %cst_21 {dimension_numbers = #tpu.dot_dimension_numbers<[1], [0], [0], [1], [0, 0, 1, 1], [], []>} : vector<8x32xf32>, vector<32x128xf32>, vector<8x128xf32> -> vector<8x128xf32>
    %119 = arith.addf %117, %118 : vector<8x128xf32>
    %120 = arith.negf %119 : vector<8x128xf32>
    %121 = math.exp %120 : vector<8x128xf32>
    %cst_22 = arith.constant 1.000000e+00 : f32
    %122 = vector.broadcast %cst_22 : f32 to vector<8x128xf32>
    %123 = arith.addf %122, %121 : vector<8x128xf32>
    %124 = arith.divf %122, %123 : vector<8x128xf32>
    %125 = math.tanh %119 : vector<8x128xf32>
    %126 = vector.extract_strided_slice %124 {offsets = [0, 0], sizes = [8, 32], strides = [1, 1]} : vector<8x128xf32> to vector<8x32xf32>
    %127 = vector.extract_strided_slice %124 {offsets = [0, 32], sizes = [8, 32], strides = [1, 1]} : vector<8x128xf32> to vector<8x32xf32>
    %128 = vector.extract_strided_slice %125 {offsets = [0, 64], sizes = [8, 32], strides = [1, 1]} : vector<8x128xf32> to vector<8x32xf32>
    %129 = vector.extract_strided_slice %124 {offsets = [0, 96], sizes = [8, 32], strides = [1, 1]} : vector<8x128xf32> to vector<8x32xf32>
    %130 = arith.mulf %127, %114 : vector<8x32xf32>
    %131 = arith.mulf %126, %128 : vector<8x32xf32>
    %132 = arith.addf %130, %131 : vector<8x32xf32>
    %133 = math.tanh %132 : vector<8x32xf32>
    %134 = arith.mulf %129, %133 : vector<8x32xf32>
    %135 = vector.extract_strided_slice %5 {offsets = [56, 0], sizes = [8, 128], strides = [1, 1]} : vector<64x128xf32> to vector<8x128xf32>
    %cst_23 = arith.constant dense<0.000000e+00> : vector<8x128xf32>
    %136 = tpu.matmul %134, %6, %cst_23 {dimension_numbers = #tpu.dot_dimension_numbers<[1], [0], [0], [1], [0, 0, 1, 1], [], []>} : vector<8x32xf32>, vector<32x128xf32>, vector<8x128xf32> -> vector<8x128xf32>
    %137 = arith.addf %135, %136 : vector<8x128xf32>
    %138 = arith.negf %137 : vector<8x128xf32>
    %139 = math.exp %138 : vector<8x128xf32>
    %cst_24 = arith.constant 1.000000e+00 : f32
    %140 = vector.broadcast %cst_24 : f32 to vector<8x128xf32>
    %141 = arith.addf %140, %139 : vector<8x128xf32>
    %142 = arith.divf %140, %141 : vector<8x128xf32>
    %143 = math.tanh %137 : vector<8x128xf32>
    %144 = vector.extract_strided_slice %142 {offsets = [0, 0], sizes = [8, 32], strides = [1, 1]} : vector<8x128xf32> to vector<8x32xf32>
    %145 = vector.extract_strided_slice %142 {offsets = [0, 32], sizes = [8, 32], strides = [1, 1]} : vector<8x128xf32> to vector<8x32xf32>
    %146 = vector.extract_strided_slice %143 {offsets = [0, 64], sizes = [8, 32], strides = [1, 1]} : vector<8x128xf32> to vector<8x32xf32>
    %147 = vector.extract_strided_slice %142 {offsets = [0, 96], sizes = [8, 32], strides = [1, 1]} : vector<8x128xf32> to vector<8x32xf32>
    %148 = arith.mulf %145, %132 : vector<8x32xf32>
    %149 = arith.mulf %144, %146 : vector<8x32xf32>
    %150 = arith.addf %148, %149 : vector<8x32xf32>
    %151 = math.tanh %150 : vector<8x32xf32>
    %152 = arith.mulf %147, %151 : vector<8x32xf32>
    %c0_25 = arith.constant 0 : index
    %c0_26 = arith.constant 0 : index
    %153 = vector.load %arg4[%c0_25, %c0_26] : memref<32x16xf32, #tpu.memory_space<vmem>>, vector<32x16xf32>
    %cst_27 = arith.constant dense<0.000000e+00> : vector<8x16xf32>
    %154 = tpu.matmul %152, %153, %cst_27 {dimension_numbers = #tpu.dot_dimension_numbers<[1], [0], [0], [1], [0, 0, 1, 1], [], []>} : vector<8x32xf32>, vector<32x16xf32>, vector<8x16xf32> -> vector<8x16xf32>
    %c0_28 = arith.constant 0 : index
    %c0_29 = arith.constant 0 : index
    %155 = vector.load %arg5[%c0_28, %c0_29] : memref<1x16xf32, #tpu.memory_space<vmem>>, vector<1x16xf32>
    %156 = vector.broadcast %155 : vector<1x16xf32> to vector<8x16xf32>
    %157 = arith.addf %154, %156 : vector<8x16xf32>
    %158 = math.tanh %157 : vector<8x16xf32>
    %c0_30 = arith.constant 0 : index
    %c0_31 = arith.constant 0 : index
    %159 = vector.load %arg6[%c0_30, %c0_31] : memref<16x128xf32, #tpu.memory_space<vmem>>, vector<16x128xf32>
    %cst_32 = arith.constant dense<0.000000e+00> : vector<8x128xf32>
    %160 = tpu.matmul %158, %159, %cst_32 {dimension_numbers = #tpu.dot_dimension_numbers<[1], [0], [0], [1], [0, 0, 1, 1], [], []>} : vector<8x16xf32>, vector<16x128xf32>, vector<8x128xf32> -> vector<8x128xf32>
    %c0_33 = arith.constant 0 : index
    %c0_34 = arith.constant 0 : index
    %161 = vector.load %arg7[%c0_33, %c0_34] : memref<1x128xf32, #tpu.memory_space<vmem>>, vector<1x128xf32>
    %162 = vector.broadcast %161 : vector<1x128xf32> to vector<8x128xf32>
    %163 = arith.addf %160, %162 : vector<8x128xf32>
    %c0_35 = arith.constant 0 : index
    %c0_36 = arith.constant 0 : index
    %164 = vector.load %arg8[%c0_35, %c0_36] : memref<8x128xf32, #tpu.memory_space<vmem>>, vector<8x128xf32>
    tpu.vector_store %arg8[%c0_35, %c0_36], %163 {strides = array<i32>} : memref<8x128xf32, #tpu.memory_space<vmem>>, vector<8x128xf32>,
    return
  }
}

</mosaic_0001>

<bundles_post_ra>
// kernel: net_forward.1
= control target key start
LH: loop header
LB: loop body
LE: loop exit
PB: predicated region body
PF: predicated region fallthrough
CT: control target
= control target key end

     0   :  { %vm67_vm0 = vcmask 1045504   ;;  %vm42_vm1 = vcmask 48128   ;;  %v788_v6 = vmov 0.0   ;;  %s789_s17 = smov 64   ;;  %vm116_vm6 = vcmask 261120   ;;  %s1015_s2 = inlined_call_operand.vmem [shape: f32[32,128], index: 2, kind: input, shape index: {}]   ;;  %s1016_s1 = inlined_call_operand.vmem [shape: f32[6,128], index: 1, kind: input, shape index: {}]   ;;  %s1017_s0 = inlined_call_operand.vmem [shape: f32[64,6], index: 0, kind: input, shape index: {}]   ;;  %s1018_s3 = inlined_call_operand.vmem [shape: f32[1,128], index: 3, kind: input, shape index: {}]   ;;  %s1019_s4 = inlined_call_operand.vmem [shape: f32[32,16], index: 4, kind: input, shape index: {}]   ;;  %s1020_s5 = inlined_call_operand.vmem [shape: f32[1,16], index: 5, kind: input, shape index: {}]   ;;  %s1021_s7 = inlined_call_operand.vmem [shape: f32[1,128], index: 7, kind: input, shape index: {}]   ;;  %s1022_s6 = inlined_call_operand.vmem [shape: f32[16,128], index: 6, kind: input, shape index: {}]   ;;  %s1023_s8 = inlined_call_operand.vmem [shape: f32[8,128], index: 8, kind: output, shape index: {}]  }
   0x1   :  { %v839_v0 = vld [vmem:[%s1015_s2 + $0x18] sm:$0xff]  ;;  %v844_v1 = vld [vmem:[%s1015_s2 + $0x10] sm:$0xff]  ;;  %v37_v2 = vld [vmem:[%s1016_s1] sm:$0x3f] }
   0x2   :  { %132 = vmatpush.msra.mxu1 %v839_v0  ;;  %688 = vmatpush.msk.msra.mxu0 %vm67_vm0, %v37_v2  ;;  %v29_v3 = vld [vmem:[%s1017_s0] sm:$0xff]  ;;  %v857_v4 = vld [vmem:[%s1015_s2 + $0x8] sm:$0xff]  ;;  %v35_v62 = vld [vmem:[%s1017_s0 + $0x30] sm:$0xff] }
   0x3   :  { %689 = vmatmul.msk.f32.vlgmr.msra.gmra.mxu0 %vm42_vm1, %v29_v3  ;;  %714 = vmatpush.msk.msra.mxu2 %vm67_vm0, %v37_v2  ;;  %v866_v5 = vld [vmem:[%s1015_s2] sm:$0xff]  ;;  %v34_v32 = vld [vmem:[%s1017_s0 + $0x28] sm:$0xff]  ;;  %v36_v63 = vld [vmem:[%s1017_s0 + $0x38] sm:$0xff] }
   0x4   :  { %133 = vmatpush.msra.mxu1 %v844_v1  ;;  %715 = vmatpush.msk.msra.mxu3 %vm67_vm0, %v37_v2  ;;  %v889_v7 = vld [vmem:[%s1018_s3] ss:$0 sm:$0xff]  ;;  %s790_s3 = smov 32   ;;  %v30_v35 = vld [vmem:[%s1017_s0 + $0x8] sm:$0xff] }
   0x5   :  { %195 = vmatpush.msrb.mxu2 %v839_v0  ;;  %695 = vmatmul.msk.f32.vlgmr.msra.gmra.mxu3 %vm42_vm1, %v35_v62  ;;  %v33_v62 = vld [vmem:[%s1017_s0 + $0x20] sm:$0xff] }
   0x6   :  { %134 = vmatpush.msra.mxu1 %v857_v4  ;;  %258 = vmatpush.msrb.mxu3 %v839_v0 }
   0x7   :  { %196 = vmatpush.msrb.mxu2 %v844_v1 }
   0x8   :  { %135 = vmatpush.msra.mxu1 %v866_v5  ;;  %259 = vmatpush.msrb.mxu3 %v844_v1 }
   0x9   :  { %197 = vmatpush.msrb.mxu2 %v857_v4  ;;  %136 = vmatmul.f32.vlgmr.msra.gmra.mxu1 %v788_v6 }
   0xa   :  { %321 = vmatpush.msrb.mxu1 %v839_v0  ;;  %260 = vmatpush.msrb.mxu3 %v857_v4 }
   0xb   :  { %198 = vmatpush.msrb.mxu2 %v866_v5  ;;  %690 = vmatmul.msk.f32.gmra.mxu0 %vm42_vm1, %v30_v35 }
   0xc   :  { %322 = vmatpush.msrb.mxu1 %v844_v1  ;;  %261 = vmatpush.msrb.mxu3 %v866_v5 }
   0xd   :  { %694 = vmatmul.msk.f32.vlgmr.msra.gmra.mxu2 %vm42_vm1, %v34_v32  ;;  %696 = vmatmul.msk.f32.gmra.mxu3 %vm42_vm1, %v36_v63 }
   0xe   :  { %323 = vmatpush.msrb.mxu1 %v857_v4  ;;  %384 = vmatpush.msra.mxu2 %v839_v0 }
   0xf   :  { %447 = vmatpush.msra.mxu3 %v839_v0 }
  0x10   :  { %324 = vmatpush.msrb.mxu1 %v866_v5  ;;  %385 = vmatpush.msra.mxu2 %v844_v1 }
  0x11   :  { %448 = vmatpush.msra.mxu3 %v844_v1 }
  0x12   :  { %510 = vmatpush.msra.mxu1 %v839_v0  ;;  %386 = vmatpush.msra.mxu2 %v857_v4 }
  0x13   :  { %449 = vmatpush.msra.mxu3 %v857_v4 }
  0x14   :  { %511 = vmatpush.msra.mxu1 %v844_v1  ;;  %387 = vmatpush.msra.mxu2 %v866_v5 }
  0x15   :  { %450 = vmatpush.msra.mxu3 %v866_v5 }
  0x16   :  { %512 = vmatpush.msra.mxu1 %v857_v4 }
  0x18   :  { %513 = vmatpush.msra.mxu1 %v866_v5 }
  0x80   :  { %v88_v8 = vpop.f32.mrf.mxu0 }
  0x81   :  { %v89_v9 = vadd.f32 %v889_v7, %v88_v8 }
  0x86   :  { %v137_v10 = vpop.f32.mrf.mxu1 }
  0x87   :  { %v140_v11 = vadd.f32 %v137_v10, %v89_v9 }
  0x88   :  { %v91_v38 = vpop.f32.mrf.mxu0  ;;  %v937_v6 = vpop.f32.mrf.mxu3 }
  0x89   :  { %722 = vtanh.f32 %v140_v11  ;;  %v697_v13 = vmul.f32 -1.442695, %v140_v11  ;;  %v92_v39 = vadd.f32 %v889_v7, %v91_v38 }
  0x8b   :  { %724 = vpow2.f32 %v697_v13 }
  0x8f   :  { %v723_v12 = vpop.eup %722 }
  0x90   :  { %163 = vrot.lane.b32.xlu0 %v723_v12, %s789_s17  ;;  %v913_v37 = vpop.f32.mrf.mxu2 }
  0x91   :  { %v725_v14 = vpop.eup %724 }
  0x92   :  { %v144_v15 = vadd.f32 1.0, %v725_v14 }
  0x94   :  { %726 = vrcp.f32 %v144_v15  ;;  %v156_v21 = vand.u32 2147483648, %v144_v15  ;;  %vm150_vm3 = vweird.f32 %v144_v15  ;;  %v154_v22 = vand.u32 2147483647, %v144_v15 }
  0x96   :  { %v157_v24 = vor.u32 1.1754944e-38, %v156_v21  ;;  %vm155_vm5 = vcmp.eq.f32.partialorder %v154_v22, 8.507059e+37 }
  0x9a   :  { %v727_v16 = vpop.eup %726 }
  0x9b   :  { %v146_v17 = vmul.f32 %v727_v16, %v144_v15  ;;  %vm151_vm2 = vweird.f32 %v727_v16 }
  0x9c   :  { %vm152_vm4 = vmor %vm150_vm3, %vm151_vm2 }
  0x9d   :  { %v147_v18 = vsub.f32 1.0, %v146_v17 }
  0x9f   :  { %v148_v19 = vmul.f32 %v727_v16, %v147_v18 }
  0xa1   :  { %v149_v20 = vadd.f32 %v727_v16, %v148_v19 }
  0xa3   :  { %v153_v23 = vsel %vm152_vm4, %v727_v16, %v149_v20 }
  0xa4   :  { %v158_v26 = vsel %vm155_vm5, %v157_v24, %v153_v23 }
  0xa5   :  { %v161_v28 = vmul.f32 0.0, %v158_v26 }
 0x102   :  { %v164_v25 = vpop.permute.xlu0 %163 }
 0x103   :  { %v166_v27 = vmul.f32 %v164_v25, %v158_v26 }
 0x105   :  { %168 = vrot.lane.b32.xlu0 %v166_v27, %s790_s3 }
 0x177   :  { %v169_v29 = vpop.permute.xlu0 %168 }
 0x178   :  { %v171_v30 = vadd.f32 %v169_v29, %v161_v28 }
 0x17a   :  { %728 = vtanh.f32 %v171_v30 }
 0x180   :  { %v729_v31 = vpop.eup %728 }
 0x181   :  { %174 = vrot.lane.b32.xlu1 %v729_v31, %s789_s17  ;;  %v32_v31 = vld [vmem:[%s1017_s0 + $0x18] sm:$0xff] }
 0x1f3   :  { %v175_v33 = vpop.permute.xlu1 %174 }
 0x1f4   :  { %v177_v34 = vmul.f32 %v175_v33, %v158_v26 }
 0x1f6   :  { %179 = vrot.lane.b32.xlu1 %v177_v34, %s790_s3 }
 0x268   :  { %v180_v36 = vpop.permute.xlu1 %179 }
 0x269   :  { %698 = vmatmul.msk.f32.vlgmr.msrb.gmra.mxu2 %vm116_vm6, %v180_v36 }
 0x26a   :  { %573 = vmatpush.msrb.mxu2 %v839_v0  ;;  %v31_v0 = vld [vmem:[%s1017_s0 + $0x10] sm:$0xff] }
 0x26b   :  { %691 = vmatmul.msk.f32.gmra.mxu0 %vm42_vm1, %v31_v0 }
 0x26c   :  { %574 = vmatpush.msrb.mxu2 %v844_v1 }
 0x26e   :  { %575 = vmatpush.msrb.mxu2 %v857_v4  ;;  %v939_v4 = vpop.f32.mrf.mxu3 }
 0x270   :  { %576 = vmatpush.msrb.mxu2 %v866_v5 }
 0x273   :  { %692 = vmatmul.msk.f32.gmra.mxu0 %vm42_vm1, %v32_v31 }
 0x27b   :  { %693 = vmatmul.msk.f32.gmra.mxu0 %vm42_vm1, %v33_v62 }
 0x2e8   :  { %v94_v5 = vpop.f32.mrf.mxu0 }
 0x2e9   :  { %v95_v8 = vadd.f32 %v889_v7, %v94_v5 }
 0x2ec   :  { %v200_v40 = vpop.f32.mrf.mxu2 }
 0x2ed   :  { %v203_v41 = vadd.f32 %v200_v40, %v92_v39 }
 0x2ef   :  { %730 = vtanh.f32 %v203_v41  ;;  %v699_v43 = vmul.f32 -1.442695, %v203_v41 }
 0x2f0   :  { %v97_v35 = vpop.f32.mrf.mxu0 }
 0x2f1   :  { %732 = vpow2.f32 %v699_v43  ;;  %v98_v36 = vadd.f32 %v889_v7, %v97_v35 }
 0x2f5   :  { %v731_v42 = vpop.eup %730 }
 0x2f6   :  { %226 = vrot.lane.b32.xlu2 %v731_v42, %s789_s17 }
 0x2f7   :  { %v733_v44 = vpop.eup %732 }
 0x2f8   :  { %v207_v45 = vadd.f32 1.0, %v733_v44 }
 0x2fa   :  { %734 = vrcp.f32 %v207_v45  ;;  %v219_v51 = vand.u32 2147483648, %v207_v45  ;;  %vm213_vm8 = vweird.f32 %v207_v45  ;;  %v217_v52 = vand.u32 2147483647, %v207_v45 }
 0x2fc   :  { %v220_v54 = vor.u32 1.1754944e-38, %v219_v51  ;;  %vm218_vm10 = vcmp.eq.f32.partialorder %v217_v52, 8.507059e+37 }
 0x300   :  { %v735_v46 = vpop.eup %734 }
 0x301   :  { %v209_v47 = vmul.f32 %v735_v46, %v207_v45  ;;  %vm214_vm7 = vweird.f32 %v735_v46 }
 0x302   :  { %vm215_vm9 = vmor %vm213_vm8, %vm214_vm7 }
 0x303   :  { %v210_v48 = vsub.f32 1.0, %v209_v47 }
 0x305   :  { %v211_v49 = vmul.f32 %v735_v46, %v210_v48 }
 0x307   :  { %v212_v50 = vadd.f32 %v735_v46, %v211_v49 }
 0x309   :  { %v216_v53 = vsel %vm215_vm9, %v735_v46, %v212_v50 }
 0x30a   :  { %v221_v56 = vsel %vm218_vm10, %v220_v54, %v216_v53 }
 0x30b   :  { %v224_v58 = vmul.f32 %v221_v56, %v171_v30 }
 0x350   :  { %v227_v55 = vpop.permute.xlu2 %226 }
 0x351   :  { %v229_v57 = vmul.f32 %v227_v55, %v221_v56 }
 0x353   :  { %231 = vrot.lane.b32.xlu2 %v229_v57, %s790_s3 }
 0x3ad   :  { %v232_v59 = vpop.permute.xlu2 %231 }
 0x3ae   :  { %v234_v60 = vadd.f32 %v232_v59, %v224_v58 }
 0x3b0   :  { %736 = vtanh.f32 %v234_v60 }
 0x3b6   :  { %v737_v61 = vpop.eup %736 }
 0x3b7   :  { %237 = vrot.lane.b32.xlu0 %v737_v61, %s789_s17 }
 0x429   :  { %v238_v2 = vpop.permute.xlu0 %237 }
 0x42a   :  { %v240_v3 = vmul.f32 %v238_v2, %v221_v56  ;;  %v100_v2 = vpop.f32.mrf.mxu0 }
 0x42c   :  { %242 = vrot.lane.b32.xlu1 %v240_v3, %s790_s3  ;;  %v101_v3 = vadd.f32 %v889_v7, %v100_v2 }
 0x49e   :  { %v243_v1 = vpop.permute.xlu1 %242 }
 0x49f   :  { %700 = vmatmul.msk.f32.vlgmr.msrb.gmra.mxu3 %vm116_vm6, %v243_v1 }
 0x522   :  { %v263_v9 = vpop.f32.mrf.mxu3 }
 0x523   :  { %v266_v10 = vadd.f32 %v263_v9, %v95_v8 }
 0x525   :  { %738 = vtanh.f32 %v266_v10  ;;  %v701_v12 = vmul.f32 -1.442695, %v266_v10 }
 0x527   :  { %740 = vpow2.f32 %v701_v12 }
 0x52b   :  { %v739_v11 = vpop.eup %738 }
 0x52c   :  { %289 = vrot.lane.b32.xlu2 %v739_v11, %s789_s17 }
 0x52d   :  { %v741_v13 = vpop.eup %740 }
 0x52e   :  { %v270_v14 = vadd.f32 1.0, %v741_v13 }
 0x530   :  { %742 = vrcp.f32 %v270_v14  ;;  %v282_v20 = vand.u32 2147483648, %v270_v14  ;;  %vm276_vm12 = vweird.f32 %v270_v14  ;;  %v280_v21 = vand.u32 2147483647, %v270_v14 }
 0x532   :  { %v283_v23 = vor.u32 1.1754944e-38, %v282_v20  ;;  %vm281_vm14 = vcmp.eq.f32.partialorder %v280_v21, 8.507059e+37 }
 0x536   :  { %v743_v15 = vpop.eup %742 }
 0x537   :  { %v272_v16 = vmul.f32 %v743_v15, %v270_v14  ;;  %vm277_vm11 = vweird.f32 %v743_v15 }
 0x538   :  { %vm278_vm13 = vmor %vm276_vm12, %vm277_vm11 }
 0x539   :  { %v273_v17 = vsub.f32 1.0, %v272_v16 }
 0x53b   :  { %v274_v18 = vmul.f32 %v743_v15, %v273_v17 }
 0x53d   :  { %v275_v19 = vadd.f32 %v743_v15, %v274_v18 }
 0x53f   :  { %v279_v22 = vsel %vm278_vm13, %v743_v15, %v275_v19 }
 0x540   :  { %v284_v25 = vsel %vm281_vm14, %v283_v23, %v279_v22 }
 0x541   :  { %v287_v27 = vmul.f32 %v284_v25, %v234_v60 }
 0x586   :  { %v290_v24 = vpop.permute.xlu2 %289 }
 0x587   :  { %v292_v26 = vmul.f32 %v290_v24, %v284_v25 }
 0x589   :  { %294 = vrot.lane.b32.xlu0 %v292_v26, %s790_s3 }
 0x5fb   :  { %v295_v28 = vpop.permute.xlu0 %294 }
 0x5fc   :  { %v297_v29 = vadd.f32 %v295_v28, %v287_v27 }
 0x5fe   :  { %744 = vtanh.f32 %v297_v29 }
 0x604   :  { %v745_v30 = vpop.eup %744 }
 0x605   :  { %300 = vrot.lane.b32.xlu1 %v745_v30, %s789_s17  ;;  %v104_v30 = vadd.f32 %v889_v7, %v913_v37 }
 0x677   :  { %v301_v32 = vpop.permute.xlu1 %300 }
 0x678   :  { %v303_v33 = vmul.f32 %v301_v32, %v284_v25 }
 0x67a   :  { %305 = vrot.lane.b32.xlu2 %v303_v33, %s790_s3 }
 0x6d4   :  { %v306_v34 = vpop.permute.xlu2 %305 }
 0x6d5   :  { %702 = vmatmul.msk.f32.vlgmr.msrb.gmra.mxu1 %vm116_vm6, %v306_v34 }
 0x752   :  { %v326_v38 = vpop.f32.mrf.mxu1 }
 0x753   :  { %v329_v39 = vadd.f32 %v326_v38, %v98_v36 }
 0x755   :  { %746 = vtanh.f32 %v329_v39  ;;  %v703_v41 = vmul.f32 -1.442695, %v329_v39 }
 0x757   :  { %748 = vpow2.f32 %v703_v41 }
 0x75b   :  { %v747_v40 = vpop.eup %746 }
 0x75c   :  { %352 = vrot.lane.b32.xlu0 %v747_v40, %s789_s17 }
 0x75d   :  { %v749_v42 = vpop.eup %748 }
 0x75e   :  { %v333_v43 = vadd.f32 1.0, %v749_v42 }
 0x760   :  { %750 = vrcp.f32 %v333_v43  ;;  %v345_v49 = vand.u32 2147483648, %v333_v43  ;;  %vm339_vm0 = vweird.f32 %v333_v43  ;;  %v343_v50 = vand.u32 2147483647, %v333_v43 }
 0x762   :  { %v346_v52 = vor.u32 1.1754944e-38, %v345_v49  ;;  %vm344_vm3 = vcmp.eq.f32.partialorder %v343_v50, 8.507059e+37 }
 0x766   :  { %v751_v44 = vpop.eup %750 }
 0x767   :  { %v335_v45 = vmul.f32 %v751_v44, %v333_v43  ;;  %vm340_vm15 = vweird.f32 %v751_v44 }
 0x768   :  { %vm341_vm2 = vmor %vm339_vm0, %vm340_vm15 }
 0x769   :  { %v336_v46 = vsub.f32 1.0, %v335_v45 }
 0x76b   :  { %v337_v47 = vmul.f32 %v751_v44, %v336_v46 }
 0x76d   :  { %v338_v48 = vadd.f32 %v751_v44, %v337_v47 }
 0x76f   :  { %v342_v51 = vsel %vm341_vm2, %v751_v44, %v338_v48 }
 0x770   :  { %v347_v54 = vsel %vm344_vm3, %v346_v52, %v342_v51 }
 0x771   :  { %v350_v56 = vmul.f32 %v347_v54, %v297_v29 }
 0x7ce   :  { %v353_v53 = vpop.permute.xlu0 %352 }
 0x7cf   :  { %v355_v55 = vmul.f32 %v353_v53, %v347_v54 }
 0x7d1   :  { %357 = vrot.lane.b32.xlu1 %v355_v55, %s790_s3 }
 0x843   :  { %v358_v57 = vpop.permute.xlu1 %357 }
 0x844   :  { %v360_v58 = vadd.f32 %v358_v57, %v350_v56  ;;  %v107_v56 = vadd.f32 %v889_v7, %v937_v6 }
 0x846   :  { %752 = vtanh.f32 %v360_v58 }
 0x84c   :  { %v753_v59 = vpop.eup %752 }
 0x84d   :  { %363 = vrot.lane.b32.xlu2 %v753_v59, %s789_s17 }
 0x8a7   :  { %v364_v60 = vpop.permute.xlu2 %363 }
 0x8a8   :  { %v366_v61 = vmul.f32 %v364_v60, %v347_v54 }
 0x8aa   :  { %368 = vrot.lane.b32.xlu0 %v366_v61, %s790_s3 }
 0x91c   :  { %v369_v63 = vpop.permute.xlu0 %368 }
 0x91d   :  { %704 = vmatmul.msk.f32.vlgmr.msra.gmra.mxu2 %vm116_vm6, %v369_v63 }
 0x9a0   :  { %v389_v0 = vpop.f32.mrf.mxu2 }
 0x9a1   :  { %v392_v1 = vadd.f32 %v389_v0, %v101_v3 }
 0x9a3   :  { %754 = vtanh.f32 %v392_v1  ;;  %v705_v8 = vmul.f32 -1.442695, %v392_v1 }
 0x9a5   :  { %756 = vpow2.f32 %v705_v8 }
 0x9a9   :  { %v755_v5 = vpop.eup %754 }
 0x9aa   :  { %415 = vrot.lane.b32.xlu1 %v755_v5, %s789_s17 }
 0x9ab   :  { %v757_v9 = vpop.eup %756 }
 0x9ac   :  { %v396_v10 = vadd.f32 1.0, %v757_v9 }
 0x9ae   :  { %758 = vrcp.f32 %v396_v10  ;;  %v408_v16 = vand.u32 2147483648, %v396_v10  ;;  %vm402_vm4 = vweird.f32 %v396_v10  ;;  %v406_v17 = vand.u32 2147483647, %v396_v10 }
 0x9b0   :  { %v409_v19 = vor.u32 1.1754944e-38, %v408_v16  ;;  %vm407_vm7 = vcmp.eq.f32.partialorder %v406_v17, 8.507059e+37 }
 0x9b4   :  { %v759_v11 = vpop.eup %758 }
 0x9b5   :  { %v398_v12 = vmul.f32 %v759_v11, %v396_v10  ;;  %vm403_vm1 = vweird.f32 %v759_v11 }
 0x9b6   :  { %vm404_vm5 = vmor %vm402_vm4, %vm403_vm1  ;;  %vm659_vm4 = vcmask 130048  }
 0x9b7   :  { %v399_v13 = vsub.f32 1.0, %v398_v12 }
 0x9b9   :  { %v400_v14 = vmul.f32 %v759_v11, %v399_v13 }
 0x9bb   :  { %v401_v15 = vadd.f32 %v759_v11, %v400_v14 }
 0x9bd   :  { %v405_v18 = vsel %vm404_vm5, %v759_v11, %v401_v15 }
 0x9be   :  { %v410_v21 = vsel %vm407_vm7, %v409_v19, %v405_v18 }
 0x9bf   :  { %v413_v23 = vmul.f32 %v410_v21, %v360_v58 }
 0xa1c   :  { %v416_v20 = vpop.permute.xlu1 %415 }
 0xa1d   :  { %v418_v22 = vmul.f32 %v416_v20, %v410_v21  ;;  %v110_v20 = vadd.f32 %v889_v7, %v939_v4 }
 0xa1f   :  { %420 = vrot.lane.b32.xlu2 %v418_v22, %s790_s3 }
 0xa79   :  { %v421_v24 = vpop.permute.xlu2 %420 }
 0xa7a   :  { %v423_v25 = vadd.f32 %v421_v24, %v413_v23 }
 0xa7c   :  { %760 = vtanh.f32 %v423_v25 }
 0xa82   :  { %v761_v26 = vpop.eup %760 }
 0xa83   :  { %426 = vrot.lane.b32.xlu0 %v761_v26, %s789_s17 }
 0xaf5   :  { %v427_v27 = vpop.permute.xlu0 %426 }
 0xaf6   :  { %v429_v28 = vmul.f32 %v427_v27, %v410_v21 }
 0xaf8   :  { %431 = vrot.lane.b32.xlu1 %v429_v28, %s790_s3 }
 0xb6a   :  { %v432_v29 = vpop.permute.xlu1 %431 }
 0xb6b   :  { %706 = vmatmul.msk.f32.vlgmr.msra.gmra.mxu3 %vm116_vm6, %v432_v29 }
 0xbee   :  { %v452_v31 = vpop.f32.mrf.mxu3 }
 0xbef   :  { %v455_v32 = vadd.f32 %v452_v31, %v104_v30 }
 0xbf1   :  { %762 = vtanh.f32 %v455_v32  ;;  %v707_v34 = vmul.f32 -1.442695, %v455_v32 }
 0xbf3   :  { %764 = vpow2.f32 %v707_v34 }
 0xbf7   :  { %v763_v33 = vpop.eup %762 }
 0xbf8   :  { %478 = vrot.lane.b32.xlu2 %v763_v33, %s789_s17 }
 0xbf9   :  { %v765_v35 = vpop.eup %764 }
 0xbfa   :  { %v459_v36 = vadd.f32 1.0, %v765_v35 }
 0xbfc   :  { %766 = vrcp.f32 %v459_v36  ;;  %v471_v43 = vand.u32 2147483648, %v459_v36  ;;  %vm465_vm9 = vweird.f32 %v459_v36  ;;  %v469_v37 = vand.u32 2147483647, %v459_v36 }
 0xbfe   :  { %v472_v45 = vor.u32 1.1754944e-38, %v471_v43  ;;  %vm470_vm11 = vcmp.eq.f32.partialorder %v469_v37, 8.507059e+37  ;;  %v621_v43 = vld [vmem:[%s1019_s4 + $0x10] sm:$0xff]  ;;  %v620_v37 = vld [vmem:[%s1019_s4 + $0x8] sm:$0xff] }
 0xc02   :  { %v767_v38 = vpop.eup %766 }
 0xc03   :  { %v461_v39 = vmul.f32 %v767_v38, %v459_v36  ;;  %vm466_vm8 = vweird.f32 %v767_v38 }
 0xc04   :  { %vm467_vm10 = vmor %vm465_vm9, %vm466_vm8 }
 0xc05   :  { %v462_v40 = vsub.f32 1.0, %v461_v39 }
 0xc07   :  { %v463_v41 = vmul.f32 %v767_v38, %v462_v40 }
 0xc09   :  { %v464_v42 = vadd.f32 %v767_v38, %v463_v41 }
 0xc0b   :  { %v468_v44 = vsel %vm467_vm10, %v767_v38, %v464_v42  ;;  %v622_v42 = vld [vmem:[%s1019_s4 + $0x18] sm:$0xff] }
 0xc0c   :  { %v473_v47 = vsel %vm470_vm11, %v472_v45, %v468_v44  ;;  %644 = vmatpush.msrb.mxu3 %v622_v42  ;;  %v619_v44 = vld [vmem:[%s1019_s4] sm:$0xff] }
 0xc0d   :  { %v476_v49 = vmul.f32 %v473_v47, %v423_v25 }
 0xc0e   :  { %645 = vmatpush.msrb.mxu3 %v621_v43 }
 0xc10   :  { %646 = vmatpush.msrb.mxu3 %v620_v37 }
 0xc12   :  { %647 = vmatpush.msrb.mxu3 %v619_v44 }
 0xc52   :  { %v479_v46 = vpop.permute.xlu2 %478 }
 0xc53   :  { %v481_v48 = vmul.f32 %v479_v46, %v473_v47 }
 0xc55   :  { %483 = vrot.lane.b32.xlu0 %v481_v48, %s790_s3  ;;  %v654_v48 = vld [vmem:[%s1022_s6 + $0x8] sm:$0xff] }
 0xc56   :  { %677 = vmatpush.msrb.mxu1 %v654_v48 }
 0xcc7   :  { %v484_v50 = vpop.permute.xlu0 %483 }
 0xcc8   :  { %v486_v51 = vadd.f32 %v484_v50, %v476_v49  ;;  %v653_v49 = vld [vmem:[%s1022_s6] sm:$0xff] }
 0xcc9   :  { %678 = vmatpush.msrb.mxu1 %v653_v49  ;;  %v720_v50 = vld [vmem:[%s1020_s5] ss:$0 sm:$0xff] }
 0xcca   :  { %768 = vtanh.f32 %v486_v51 }
 0xcd0   :  { %v769_v52 = vpop.eup %768 }
 0xcd1   :  { %489 = vrot.lane.b32.xlu1 %v769_v52, %s789_s17 }
 0xd43   :  { %v490_v53 = vpop.permute.xlu1 %489 }
 0xd44   :  { %v492_v54 = vmul.f32 %v490_v53, %v473_v47 }
 0xd46   :  { %494 = vrot.lane.b32.xlu2 %v492_v54, %s790_s3  ;;  %v721_v54 = vld [vmem:[%s1021_s7] ss:$0 sm:$0xff] }
 0xda0   :  { %v495_v55 = vpop.permute.xlu2 %494 }
 0xda1   :  { %708 = vmatmul.msk.f32.vlgmr.msra.gmra.mxu1 %vm116_vm6, %v495_v55 }
 0xe1e   :  { %v515_v57 = vpop.f32.mrf.mxu1 }
 0xe1f   :  { %v518_v58 = vadd.f32 %v515_v57, %v107_v56 }
 0xe21   :  { %770 = vtanh.f32 %v518_v58  ;;  %v709_v60 = vmul.f32 -1.442695, %v518_v58 }
 0xe23   :  { %772 = vpow2.f32 %v709_v60 }
 0xe27   :  { %v771_v59 = vpop.eup %770 }
 0xe28   :  { %541 = vrot.lane.b32.xlu0 %v771_v59, %s789_s17 }
 0xe29   :  { %v773_v61 = vpop.eup %772 }
 0xe2a   :  { %v522_v62 = vadd.f32 1.0, %v773_v61 }
 0xe2c   :  { %774 = vrcp.f32 %v522_v62  ;;  %v534_v5 = vand.u32 2147483648, %v522_v62  ;;  %vm528_vm13 = vweird.f32 %v522_v62  ;;  %v532_v6 = vand.u32 2147483647, %v522_v62 }
 0xe2e   :  { %v535_v9 = vor.u32 1.1754944e-38, %v534_v5  ;;  %vm533_vm15 = vcmp.eq.f32.partialorder %v532_v6, 8.507059e+37 }
 0xe32   :  { %v775_v63 = vpop.eup %774 }
 0xe33   :  { %v524_v2 = vmul.f32 %v775_v63, %v522_v62  ;;  %vm529_vm12 = vweird.f32 %v775_v63 }
 0xe34   :  { %vm530_vm14 = vmor %vm528_vm13, %vm529_vm12 }
 0xe35   :  { %v525_v3 = vsub.f32 1.0, %v524_v2 }
 0xe37   :  { %v526_v0 = vmul.f32 %v775_v63, %v525_v3 }
 0xe39   :  { %v527_v1 = vadd.f32 %v775_v63, %v526_v0 }
 0xe3b   :  { %v531_v8 = vsel %vm530_vm14, %v775_v63, %v527_v1 }
 0xe3c   :  { %v536_v11 = vsel %vm533_vm15, %v535_v9, %v531_v8 }
 0xe3d   :  { %v539_v13 = vmul.f32 %v536_v11, %v486_v51 }
 0xe9a   :  { %v542_v10 = vpop.permute.xlu0 %541 }
 0xe9b   :  { %v544_v12 = vmul.f32 %v542_v10, %v536_v11 }
 0xe9d   :  { %546 = vrot.lane.b32.xlu1 %v544_v12, %s790_s3 }
 0xf0f   :  { %v547_v14 = vpop.permute.xlu1 %546 }
 0xf10   :  { %v549_v15 = vadd.f32 %v547_v14, %v539_v13 }
 0xf12   :  { %776 = vtanh.f32 %v549_v15 }
 0xf18   :  { %v777_v16 = vpop.eup %776 }
 0xf19   :  { %552 = vrot.lane.b32.xlu2 %v777_v16, %s789_s17 }
 0xf73   :  { %v553_v17 = vpop.permute.xlu2 %552 }
 0xf74   :  { %v555_v18 = vmul.f32 %v553_v17, %v536_v11 }
 0xf76   :  { %557 = vrot.lane.b32.xlu0 %v555_v18, %s790_s3 }
 0xfe8   :  { %v558_v19 = vpop.permute.xlu0 %557 }
 0xfe9   :  { %710 = vmatmul.msk.f32.vlgmr.msrb.gmra.mxu2 %vm116_vm6, %v558_v19 }
0x106c   :  { %v578_v21 = vpop.f32.mrf.mxu2 }
0x106d   :  { %v581_v22 = vadd.f32 %v578_v21, %v110_v20 }
0x106f   :  { %778 = vtanh.f32 %v581_v22  ;;  %v711_v24 = vmul.f32 -1.442695, %v581_v22 }
0x1071   :  { %780 = vpow2.f32 %v711_v24 }
0x1075   :  { %v779_v23 = vpop.eup %778 }
0x1076   :  { %604 = vrot.lane.b32.xlu1 %v779_v23, %s789_s17 }
0x1077   :  { %v781_v25 = vpop.eup %780 }
0x1078   :  { %v585_v26 = vadd.f32 1.0, %v781_v25 }
0x107a   :  { %782 = vrcp.f32 %v585_v26  ;;  %v597_v32 = vand.u32 2147483648, %v585_v26  ;;  %vm591_vm2 = vweird.f32 %v585_v26  ;;  %v595_v7 = vand.u32 2147483647, %v585_v26 }
0x107c   :  { %v598_v33 = vor.u32 1.1754944e-38, %v597_v32  ;;  %vm596_vm1 = vcmp.eq.f32.partialorder %v595_v7, 8.507059e+37 }
0x1080   :  { %v783_v27 = vpop.eup %782 }
0x1081   :  { %v587_v28 = vmul.f32 %v783_v27, %v585_v26  ;;  %vm592_vm0 = vweird.f32 %v783_v27 }
0x1082   :  { %vm593_vm3 = vmor %vm591_vm2, %vm592_vm0 }
0x1083   :  { %v588_v29 = vsub.f32 1.0, %v587_v28 }
0x1085   :  { %v589_v30 = vmul.f32 %v783_v27, %v588_v29 }
0x1087   :  { %v590_v31 = vadd.f32 %v783_v27, %v589_v30 }
0x1089   :  { %v594_v4 = vsel %vm593_vm3, %v783_v27, %v590_v31 }
0x108a   :  { %v599_v35 = vsel %vm596_vm1, %v598_v33, %v594_v4 }
0x108b   :  { %v602_v38 = vmul.f32 %v599_v35, %v549_v15 }
0x10e8   :  { %v605_v34 = vpop.permute.xlu1 %604 }
0x10e9   :  { %v607_v36 = vmul.f32 %v605_v34, %v599_v35 }
0x10eb   :  { %609 = vrot.lane.b32.xlu2 %v607_v36, %s790_s3 }
0x1145   :  { %v610_v39 = vpop.permute.xlu2 %609 }
0x1146   :  { %v612_v40 = vadd.f32 %v610_v39, %v602_v38 }
0x1148   :  { %784 = vtanh.f32 %v612_v40 }
0x114e   :  { %v785_v41 = vpop.eup %784 }
0x114f   :  { %615 = vrot.lane.b32.xlu0 %v785_v41, %s789_s17 }
0x11c1   :  { %v616_v45 = vpop.permute.xlu0 %615 }
0x11c2   :  { %v618_v46 = vmul.f32 %v616_v45, %v599_v35 }
0x11c4   :  { %628 = vrot.lane.b32.xlu1 %v618_v46, %s790_s3 }
0x1236   :  { %v629_v47 = vpop.permute.xlu1 %628 }
0x1237   :  { %712 = vmatmul.msk.f32.vlgmr.msrb.gmra.mxu3 %vm116_vm6, %v629_v47 }
0x12ba   :  { %v649_v51 = vpop.f32.mrf.mxu3 }
0x12bb   :  { %v650_v52 = vadd.f32 %v720_v50, %v649_v51 }
0x12bd   :  { %786 = vtanh.f32 %v650_v52 }
0x12c3   :  { %v787_v53 = vpop.eup %786 }
0x12c4   :  { %713 = vmatmul.msk.f32.vlgmr.msrb.gmra.mxu1 %vm659_vm4, %v787_v53 }
0x1341   :  { %v680_v55 = vpop.f32.mrf.mxu1 }
0x1342   :  { %v681_v56 = vadd.f32 %v721_v54, %v680_v55 }
0x1344   :  { %683 = vst [vmem:[%s1023_s8] sm:$0xff] %v681_v56 }

</bundles_post_ra>
